<compile_context>
chip_gen: v6e
topology: v6e:2x2x1
jax: 0.10.0
libtpu: 0.0.40
codegen_flags: <defaults>
</compile_context>

<pallas_src>
import functools

import jax
import jax.numpy as jnp
from jax import lax
from jax.experimental import pallas as pl
from jax.experimental.pallas import tpu as pltpu


def _qkv_proj_kernel(x_ref, wqkv_ref, q_ref, k_ref, v_ref, *, heads, dim_head):
    """1x1-conv QKV projection: x (C, TN) bf16 -> q/k/v (heads, d, TN) bf16."""
    hidden = heads * dim_head
    x = x_ref[...]                                    # (C, TN) bf16, lane-dense in N
    tn = x.shape[-1]

    def proj(col0, out_ref):
        w = wqkv_ref[:, col0:col0 + hidden]           # (C, hidden) bf16, lane-dense
        # r[o, n] = sum_c w[c, o] * x[c, n]   (contract the tiny C axis)
        r = lax.dot_general(w, x, (((0,), (0,)), ((), ())),
                            preferred_element_type=jnp.float32)   # (hidden, TN) f32
        out_ref[...] = r.reshape(heads, dim_head, tn).astype(jnp.bfloat16)

    proj(0, q_ref)               # q columns were pre-scaled by dim_head**-0.5
    proj(hidden, k_ref)
    proj(2 * hidden, v_ref)


def _attn_kernel(q_ref, k_ref, v_ref, wout_ref, bout_ref, o_ref, acc_ref,
                 *, heads, dim_head, n_real, softmax_bf16, unroll):
    # q_ref   : (heads, d, TQ)   bf16 (already scaled)
    # k_ref   : (heads, d, Np)   bf16 (block resident across query tiles)
    # v_ref   : (heads, d, Np)   bf16 (block resident across query tiles)
    # wout_ref: (C, hidden)      bf16
    # bout_ref: (C, 1)           f32
    # o_ref   : (C, TQ)          output tile (lane-dense along N)
    # acc_ref : (heads, d, TQ)   f32 scratch (per-head attention output)
    n_pad = k_ref.shape[-1]
    q_tile = q_ref.shape[-1]

    def head_body(h, carry):
        qh = q_ref[h]                                  # (d, TQ)
        kh = k_ref[h]                                  # (d, Np)
        vh = v_ref[h]                                  # (d, Np)
        # s[j, i] = sum_d k[d, j] * q[d, i] -> keys on sublanes, queries on lanes,
        # so per-query max / sum land directly in (1, TQ) layout (no transposes).
        s = lax.dot_general(kh, qh, (((0,), (0,)), ((), ())),
                            preferred_element_type=jnp.float32)   # (Np, TQ) f32
        if n_real != n_pad:   # static branch: mask zero-padded key positions
            key_idx = lax.broadcasted_iota(jnp.int32, s.shape, 0)
            s = jnp.where(key_idx < n_real, s, -jnp.inf)
        m = jnp.max(s, axis=0, keepdims=True)                     # (1, TQ)
        if softmax_bf16:      # v6e / v7x: bf16 EUP, p feeds the MXU with no extra cast
            p = jnp.exp((s - m).astype(jnp.bfloat16))             # (Np, TQ) bf16
            l = jnp.sum(p, axis=0, keepdims=True, dtype=jnp.float32)
        else:                 # v5e / unknown: keep elementwise math in f32
            p_f32 = jnp.exp(s - m)
            l = jnp.sum(p_f32, axis=0, keepdims=True)
            p = p_f32.astype(jnp.bfloat16)
        # o[d, i] = sum_j v[d, j] * p[j, i]
        oh = lax.dot_general(vh, p, (((1,), (0,)), ((), ())),
                             preferred_element_type=jnp.float32)  # (d, TQ) f32
        # Normalize AFTER the PV matmul: (d, TQ)*(1, TQ) instead of scaling (Np, TQ).
        acc_ref[h] = oh * pl.reciprocal(l, approx=True)
        return carry

    lax.fori_loop(0, heads, head_body, 0, unroll=unroll)

    # 'b h (x y) d -> b (h d) x y'  => channel = h*dim_head + d == leading-dim collapse.
    out_hid = acc_ref[...].reshape(heads * dim_head, q_tile)      # (hidden, TQ)

    # to_out 1x1 conv with bias.
    y = jnp.dot(wout_ref[...], out_hid.astype(jnp.bfloat16),
                preferred_element_type=jnp.float32) + bout_ref[...]
    o_ref[...] = y.astype(o_ref.dtype)


def _tpu_kind():
    try:
        return jax.devices()[0].device_kind.lower()
    except Exception:
        return ""


def attention_forward(x_nchw, w_qkv, w_out, b_out, *, heads=4, dim_head=32):
    """Equivalent of Attention.forward. x_nchw: (B, C, H, W)."""
    B, C, H, W = x_nchw.shape
    N = H * W
    hidden = heads * dim_head
    scale = dim_head ** (-0.5)
    out_dtype = x_nchw.dtype
    out_itemsize = jnp.dtype(out_dtype).itemsize

    # ---- generation-aware knobs -------------------------------------------
    kind = _tpu_kind()
    big_vmem = ("v5" in kind) or ("v6" in kind)            # 128 MiB parts
    softmax_bf16 = ("v6" in kind) or ("v7" in kind) or ("tpu7" in kind)
    vmem_budget = (96 << 20) if big_vmem else (44 << 20)   # v7x/unknown: 64 MiB phys

    # ---- padding & query-tile selection -----------------------------------
    n_pad = ((N + 127) // 128) * 128

    def attn_vmem_need(tq, u):
        kv_block = hidden * n_pad * 2                      # bf16, per K / V block
        q_block = hidden * tq * 2
        w_bytes = C * hidden * 2 + C * 128 * 4             # wout + lane-padded bias
        out_block = C * tq * out_itemsize
        acc_bytes = hidden * tq * 4
        live = (heads if u else 1) * n_pad * tq * 8        # s f32 + p, per live head
        return (2 * q_block + 2 * 2 * kv_block + 2 * w_bytes + 2 * out_block
                + acc_bytes + live)

    q_tile, unroll = 128, False
    for cand in (1024, 512, 256, 128):
        if cand <= n_pad and n_pad % cand == 0:
            u = heads * n_pad * cand * 8 <= (4 << 20)      # unroll only if tiny live set
            if attn_vmem_need(cand, u) <= vmem_budget:
                q_tile, unroll = cand, u
                break
    nq = n_pad // q_tile
    attn_vmem = int(min(max(attn_vmem_need(q_tile, unroll) * 5 // 4, 32 << 20),
                        vmem_budget))
    proj_need = (2 * C * q_tile * 2 + 2 * C * 3 * hidden * 2
                 + 6 * hidden * q_tile * 2 + 3 * hidden * q_tile * 4)
    proj_vmem = int(min(max(proj_need * 2, 16 << 20), vmem_budget))

    # ---- glue (no activation transposes) -----------------------------------
    x_bcn = x_nchw.reshape(B, C, N)
    if n_pad != N:
        x_bcn = jnp.pad(x_bcn, ((0, 0), (0, 0), (0, n_pad - N)))
    x_bcn = x_bcn.astype(jnp.bfloat16)

    # to_qkv weight as (C, 3*hidden): hidden on lanes (C on lanes would pad to 128).
    wqkv_t = jnp.transpose(w_qkv.reshape(3 * hidden, C))   # (C, 3*hidden)
    wqkv_t = wqkv_t.at[:, :hidden].multiply(scale)         # fold q-scale (no qkv bias)
    wqkv_t = wqkv_t.astype(jnp.bfloat16)
    wout = w_out.reshape(C, hidden).astype(jnp.bfloat16)
    bout = b_out.reshape(C, 1).astype(jnp.float32)

    # ---- pass 1: QKV projection (computed once per batch element) ----------
    proj_kernel = functools.partial(_qkv_proj_kernel, heads=heads, dim_head=dim_head)
    qkv_shape = jax.ShapeDtypeStruct((B, heads, dim_head, n_pad), jnp.bfloat16)
    q_all, k_all, v_all = pl.pallas_call(
        proj_kernel,
        out_shape=(qkv_shape, qkv_shape, qkv_shape),
        grid_spec=pltpu.PrefetchScalarGridSpec(
            num_scalar_prefetch=0,
            grid=(B, nq),
            in_specs=[
                pl.BlockSpec((None, C, q_tile), lambda b, t: (b, 0, t)),
                pl.BlockSpec((C, 3 * hidden), lambda b, t: (0, 0)),
            ],
            out_specs=(
                pl.BlockSpec((None, heads, dim_head, q_tile), lambda b, t: (b, 0, 0, t)),
                pl.BlockSpec((None, heads, dim_head, q_tile), lambda b, t: (b, 0, 0, t)),
                pl.BlockSpec((None, heads, dim_head, q_tile), lambda b, t: (b, 0, 0, t)),
            ),
        ),
        compiler_params=pltpu.CompilerParams(
            dimension_semantics=("parallel", "parallel"),
            vmem_limit_bytes=proj_vmem),
    )(x_bcn, wqkv_t)

    # ---- pass 2: per-head attention + to_out --------------------------------
    attn_kernel = functools.partial(
        _attn_kernel, heads=heads, dim_head=dim_head, n_real=N,
        softmax_bf16=softmax_bf16, unroll=unroll)
    out_bcn = pl.pallas_call(
        attn_kernel,
        out_shape=jax.ShapeDtypeStruct((B, C, n_pad), out_dtype),
        grid_spec=pltpu.PrefetchScalarGridSpec(
            num_scalar_prefetch=0,
            grid=(B, nq),
            in_specs=[
                pl.BlockSpec((None, heads, dim_head, q_tile),
                             lambda b, qi: (b, 0, 0, qi)),
                pl.BlockSpec((None, heads, dim_head, n_pad),
                             lambda b, qi: (b, 0, 0, 0)),   # resident across qi
                pl.BlockSpec((None, heads, dim_head, n_pad),
                             lambda b, qi: (b, 0, 0, 0)),   # resident across qi
                pl.BlockSpec((C, hidden), lambda b, qi: (0, 0)),
                pl.BlockSpec((C, 1), lambda b, qi: (0, 0)),
            ],
            out_specs=pl.BlockSpec((None, C, q_tile), lambda b, qi: (b, 0, qi)),
            scratch_shapes=[pltpu.VMEM((heads, dim_head, q_tile), jnp.float32)],
        ),
        compiler_params=pltpu.CompilerParams(
            dimension_semantics=("parallel", "parallel"),
            vmem_limit_bytes=attn_vmem),
    )(q_all, k_all, v_all, wout, bout)

    if n_pad != N:
        out_bcn = out_bcn[:, :, :N]
    return out_bcn.reshape(B, C, H, W)


def _attention_reference(x_nchw, w_qkv, w_out, b_out, *, heads=4, dim_head=32):
    """Pure-JAX reference mirroring the PyTorch forward pass."""
    B, C, H, W = x_nchw.shape
    N = H * W
    hidden = heads * dim_head
    scale = dim_head ** (-0.5)

    wq = w_qkv.reshape(3 * hidden, C)
    qkv = jnp.einsum('oc,bcn->bon', wq, x_nchw.reshape(B, C, N))     # (B, 3*hidden, N)
    q, k, v = jnp.split(qkv, 3, axis=1)
    reh = lambda t: t.reshape(B, heads, dim_head, N)                  # b h d (xy)
    q, k, v = reh(q) * scale, reh(k), reh(v)
    sim = jnp.einsum('bhdi,bhdj->bhij', q, k)
    sim = sim - jnp.max(sim, axis=-1, keepdims=True)
    attn = jax.nn.softmax(sim, axis=-1)
    out = jnp.einsum('bhij,bhdj->bhid', attn, v)                      # (B, h, N, d)
    out = jnp.transpose(out, (0, 1, 3, 2)).reshape(B, hidden, H, W)   # b (h d) x y
    wo = w_out.reshape(C, hidden)
    y = jnp.einsum('oc,bcn->bon', wo, out.reshape(B, hidden, N))
    return (y + b_out.reshape(1, C, 1)).reshape(B, C, H, W)


if __name__ == "__main__":
    # Small shapes consistent with the module: dim=4, heads=4, dim_head=32
    B, C, H, W = 2, 4, 16, 16
    heads, dim_head = 4, 32
    hidden = heads * dim_head

    key = jax.random.PRNGKey(0)
    k_x, k_qkv, k_out, k_b = jax.random.split(key, 4)

    x = jax.random.normal(k_x, (B, C, H, W), dtype=jnp.float32)
    # Deterministic synthetic parameters (Conv2d 1x1 weight shapes).
    w_qkv = 0.05 * jax.random.normal(k_qkv, (3 * hidden, C, 1, 1), dtype=jnp.float32)
    w_out = 0.05 * jax.random.normal(k_out, (C, hidden, 1, 1), dtype=jnp.float32)
    b_out = 0.05 * jax.random.normal(k_b, (C,), dtype=jnp.float32)

    y = attention_forward(x, w_qkv, w_out, b_out, heads=heads, dim_head=dim_head)
    y = jax.block_until_ready(y)

    y_ref = _attention_reference(x, w_qkv, w_out, b_out, heads=heads, dim_head=dim_head)
    assert y.shape == (B, C, H, W)
    # bf16 MXU operands + bf16 projections + approx reciprocal -> small bounded deltas.
    assert jnp.allclose(y, y_ref, rtol=5e-3, atol=5e-3), "mismatch vs reference"

    print("KERNEL_OK")
</pallas_src>

<mosaic_0001>
module attributes {stable_mosaic.version = 11 : i64} {
  func.func @_qkv_proj_kernel(%arg0: i32, %arg1: i32, %arg2: memref<1x4x256xbf16, #tpu.memory_space<vmem>>, %arg3: memref<4x384xbf16, #tpu.memory_space<vmem>>, %arg4: memref<1x4x32x256xbf16, #tpu.memory_space<vmem>>, %arg5: memref<1x4x32x256xbf16, #tpu.memory_space<vmem>>, %arg6: memref<1x4x32x256xbf16, #tpu.memory_space<vmem>>) attributes {dimension_semantics = [#tpu.dimension_semantics<parallel>, #tpu.dimension_semantics<parallel>], iteration_bounds = array<i64: 2, 1>, scalar_prefetch = 0 : i64, scratch_operands = 0 : i64, tpu.core_type = #tpu.core_type<tc>, window_params = [{transform_indices = @transform_0, window_bounds = array<i64: 1, 4, 256>}, {pipeline_mode = #tpu.pipeline_mode<synchronous>, transform_indices = @transform_1, window_bounds = array<i64: 4, 384>}, {transform_indices = @transform_2, window_bounds = array<i64: 1, 4, 32, 256>}, {transform_indices = @transform_3, window_bounds = array<i64: 1, 4, 32, 256>}, {transform_indices = @transform_4, window_bounds = array<i64: 1, 4, 32, 256>}]} {
    %c0 = arith.constant 0 : index
    %c0_0 = arith.constant 0 : index
    %c0_1 = arith.constant 0 : index
    %0 = vector.load %arg2[%c0, %c0_0, %c0_1] : memref<1x4x256xbf16, #tpu.memory_space<vmem>>, vector<1x4x256xbf16>
    %1 = vector.shape_cast %0 : vector<1x4x256xbf16> to vector<4x256xbf16>
    %c0_2 = arith.constant 0 : index
    %c0_3 = arith.constant 0 : index
    %2 = vector.load %arg3[%c0_2, %c0_3] : memref<4x384xbf16, #tpu.memory_space<vmem>>, vector<4x128xbf16>
    %cst = arith.constant dense<0.000000e+00> : vector<128x256xf32>
    %3 = tpu.matmul %2, %1, %cst {dimension_numbers = #tpu.dot_dimension_numbers<[0], [0], [1], [1], [0, 1, 1, 1], [], []>} : vector<4x128xbf16>, vector<4x256xbf16>, vector<128x256xf32> -> vector<128x256xf32>
    %4 = vector.shape_cast %3 : vector<128x256xf32> to vector<4x32x256xf32>
    %5 = arith.truncf %4 : vector<4x32x256xf32> to vector<4x32x256xbf16>
    %c0_4 = arith.constant 0 : index
    %c0_5 = arith.constant 0 : index
    %c0_6 = arith.constant 0 : index
    %c0_7 = arith.constant 0 : index
    %6 = vector.load %arg4[%c0_4, %c0_5, %c0_6, %c0_7] : memref<1x4x32x256xbf16, #tpu.memory_space<vmem>>, vector<1x4x32x256xbf16>
    %7 = vector.shape_cast %6 : vector<1x4x32x256xbf16> to vector<4x32x256xbf16>
    %8 = vector.shape_cast %5 : vector<4x32x256xbf16> to vector<1x4x32x256xbf16>
    tpu.vector_store %arg4[%c0_4, %c0_5, %c0_6, %c0_7], %8 {strides = array<i32>} : memref<1x4x32x256xbf16, #tpu.memory_space<vmem>>, vector<1x4x32x256xbf16>,
    %c0_8 = arith.constant 0 : index
    %c128 = arith.constant 128 : index
    %9 = vector.load %arg3[%c0_8, %c128] : memref<4x384xbf16, #tpu.memory_space<vmem>>, vector<4x128xbf16>
    %cst_9 = arith.constant dense<0.000000e+00> : vector<128x256xf32>
    %10 = tpu.matmul %9, %1, %cst_9 {dimension_numbers = #tpu.dot_dimension_numbers<[0], [0], [1], [1], [0, 1, 1, 1], [], []>} : vector<4x128xbf16>, vector<4x256xbf16>, vector<128x256xf32> -> vector<128x256xf32>
    %11 = vector.shape_cast %10 : vector<128x256xf32> to vector<4x32x256xf32>
    %12 = arith.truncf %11 : vector<4x32x256xf32> to vector<4x32x256xbf16>
    %c0_10 = arith.constant 0 : index
    %c0_11 = arith.constant 0 : index
    %c0_12 = arith.constant 0 : index
    %c0_13 = arith.constant 0 : index
    %13 = vector.load %arg5[%c0_10, %c0_11, %c0_12, %c0_13] : memref<1x4x32x256xbf16, #tpu.memory_space<vmem>>, vector<1x4x32x256xbf16>
    %14 = vector.shape_cast %13 : vector<1x4x32x256xbf16> to vector<4x32x256xbf16>
    %15 = vector.shape_cast %12 : vector<4x32x256xbf16> to vector<1x4x32x256xbf16>
    tpu.vector_store %arg5[%c0_10, %c0_11, %c0_12, %c0_13], %15 {strides = array<i32>} : memref<1x4x32x256xbf16, #tpu.memory_space<vmem>>, vector<1x4x32x256xbf16>,
    %c0_14 = arith.constant 0 : index
    %c256 = arith.constant 256 : index
    %16 = vector.load %arg3[%c0_14, %c256] : memref<4x384xbf16, #tpu.memory_space<vmem>>, vector<4x128xbf16>
    %cst_15 = arith.constant dense<0.000000e+00> : vector<128x256xf32>
    %17 = tpu.matmul %16, %1, %cst_15 {dimension_numbers = #tpu.dot_dimension_numbers<[0], [0], [1], [1], [0, 1, 1, 1], [], []>} : vector<4x128xbf16>, vector<4x256xbf16>, vector<128x256xf32> -> vector<128x256xf32>
    %18 = vector.shape_cast %17 : vector<128x256xf32> to vector<4x32x256xf32>
    %19 = arith.truncf %18 : vector<4x32x256xf32> to vector<4x32x256xbf16>
    %c0_16 = arith.constant 0 : index
    %c0_17 = arith.constant 0 : index
    %c0_18 = arith.constant 0 : index
    %c0_19 = arith.constant 0 : index
    %20 = vector.load %arg6[%c0_16, %c0_17, %c0_18, %c0_19] : memref<1x4x32x256xbf16, #tpu.memory_space<vmem>>, vector<1x4x32x256xbf16>
    %21 = vector.shape_cast %20 : vector<1x4x32x256xbf16> to vector<4x32x256xbf16>
    %22 = vector.shape_cast %19 : vector<4x32x256xbf16> to vector<1x4x32x256xbf16>
    tpu.vector_store %arg6[%c0_16, %c0_17, %c0_18, %c0_19], %22 {strides = array<i32>} : memref<1x4x32x256xbf16, #tpu.memory_space<vmem>>, vector<1x4x32x256xbf16>,
    return
  }
  func.func @transform_0(%arg0: i32, %arg1: i32) -> (i32, i32, i32) {
    %c0_i32 = arith.constant 0 : i32
    %c0_i32_0 = arith.constant 0 : i32
    return %arg0, %c0_i32, %arg1 : i32, i32, i32
  }
  func.func @transform_1(%arg0: i32, %arg1: i32) -> (i32, i32) {
    %c0_i32 = arith.constant 0 : i32
    %c0_i32_0 = arith.constant 0 : i32
    %c0_i32_1 = arith.constant 0 : i32
    return %c0_i32, %c0_i32_0 : i32, i32
  }
  func.func @transform_2(%arg0: i32, %arg1: i32) -> (i32, i32, i32, i32) {
    %c0_i32 = arith.constant 0 : i32
    %c0_i32_0 = arith.constant 0 : i32
    %c0_i32_1 = arith.constant 0 : i32
    return %arg0, %c0_i32, %c0_i32_0, %arg1 : i32, i32, i32, i32
  }
  func.func @transform_3(%arg0: i32, %arg1: i32) -> (i32, i32, i32, i32) {
    %c0_i32 = arith.constant 0 : i32
    %c0_i32_0 = arith.constant 0 : i32
    %c0_i32_1 = arith.constant 0 : i32
    return %arg0, %c0_i32, %c0_i32_0, %arg1 : i32, i32, i32, i32
  }
  func.func @transform_4(%arg0: i32, %arg1: i32) -> (i32, i32, i32, i32) {
    %c0_i32 = arith.constant 0 : i32
    %c0_i32_0 = arith.constant 0 : i32
    %c0_i32_1 = arith.constant 0 : i32
    return %arg0, %c0_i32, %c0_i32_0, %arg1 : i32, i32, i32, i32
  }
}

</mosaic_0001>

<bundles_post_ra>
// kernel: tpu_custom_call.1
= control target key start
LH: loop header
LB: loop body
LE: loop exit
PB: predicated region body
PF: predicated region fallthrough
CT: control target
= control target key end

     0   :  { %10 = vsyncpa [#allocation3], 0  ;;  %s2143_s0 = inlined_call_operand.hbm [shape: bf16[2,4,256], index: 0, kind: input, shape index: {}]   ;;  %s2144_s1 = inlined_call_operand.hbm [shape: bf16[4,384], index: 1, kind: input, shape index: {}]   ;;  %s2145_s2 = inlined_call_operand.hbm [shape: bf16[2,4,32,256], index: 2, kind: output, shape index: {0}]   ;;  %s2146_s3 = inlined_call_operand.hbm [shape: bf16[2,4,32,256], index: 3, kind: output, shape index: {1}]   ;;  %s2147_s4 = inlined_call_operand.hbm [shape: bf16[2,4,32,256], index: 4, kind: output, shape index: {2}]  }
   0x1   :  { %12 = vsyncpa [#allocation3 + $0x1], 0 }
   0x2   :  { %13 = vsyncpa [#allocation6], 0 }
   0x3   :  { %14 = vsyncpa [#allocation4], 0 }
   0x4   :  { %16 = vsyncpa [#allocation4 + $0x1], 0 }
   0x5   :  { %17 = vsyncpa [#allocation9], 0 }
   0x6   :  { %19 = vsyncpa [#allocation9 + $0x1], 0  ;;  %s1784_s15 = smov 0   ;;  %s1786_s16 = smov 0  }
   0x7   :  { %s1788_s17 = smov 0   ;;  %s1790_s18 = smov 0  }
   0x8   :  { %s1792_s19 = smov 0   ;;  %s1794_s20 = smov 0  }
   0x9 LB: > { %s1815_s21 = sadd.s32 4294967295, %s1749_s20   ;;  %s2148_s22 = sadd.s32 4294967294, %s1749_s20   ;;  %s1749_s20 = sphi %s1794_s20, %s25_s20   ;;  %s1745_s19 = sphi %s1792_s19, %s2166_s19   ;;  %s1741_s18 = sphi %s1790_s18, %s2165_s18   ;;  %s1737_s17 = sphi %s1788_s17, %s2164_s17   ;;  %s1733_s16 = sphi %s1786_s16, %s2163_s16   ;;  %s1729_s15 = sphi %s1784_s15, %s2162_s15  }
   0xa   : > { %p59_p0 = scmp.ne.s32.totalorder %s1733_s16, %s1729_s15  ;;  %p2149_p1 = scmp.eq.s32.totalorder %s1815_s21, 0 }
   0xb   : > { %p112_p3 = scmp.eq.s32.totalorder %s2148_s22, 1  ;;  %p1316_p5 = scmp.ge.s32.totalorder %s1749_s20, 1 }
   0xc   : > { %p1826_p4 = por %p2149_p1, %p59_p0  ;;  %p175_p7 = scmp.lt.s32.totalorder %s1749_s20, 3 }
   0xd   : > { %p1831_p6 = por %p112_p3, %p59_p0  ;;  %s1751_s26 = smov [#allocation5]  }
   0xe   : > { %p1836_p8 = pnand %p1316_p5, %p175_p7  ;;  %s188_s27 = sshll.u32 %s1751_s26, 4  ;;  %s189_s27 = int_to_ptr.vmem [resolvable:$true] %s188_s27 }
   0xf   : > { %s2151_s24 = scalar_select %p1831_p6, 1, 0 }
  0x10   : > { %p1481_p10 = pneg %p1836_p8  ;;  %s37_s29 = sadd.s32 1, %s1745_s19 }
  0x11   : > { %s46_s30 = sadd.s32 1, %s1737_s17  ;;  %p39_p12 = scmp.ge.s32.totalorder %s37_s29, 2 }
  0x12   : > { %p1845_p11 = pnand %p1481_p10, %p2149_p1  ;;  %s1566_s5 = scalar_lea.vmem %s189_s27, 96 }
  0x13   : > { %p1567_p0 = scmp.ne.s32.totalorder %s189_s27, %s1566_s5  ;;  %p1574_p7 = scmp.lt.s32.totalorder %s189_s27, %s189_s27 }
  0x14   : > { %p1557_p13 = pneg %p1845_p11  ;;  %p1575_p2 = scmp.lt.s32.totalorder %s1566_s5, %s1566_s5 }
  0x16   : > { %p1569_p3 = pnand %p1567_p0, %p1557_p13  ;;  %p1576_p9 = por %p1575_p2, %p1574_p7 }
  0x18   : > { %p1570_p5 = pneg %p1569_p3 }
  0x1a   : > { %p1577_p6 = pnand %p1576_p9, %p1570_p5 }
  0x1c   : > { %1580 = shalt.err (!%p1577_p6)
}
  0x1d   : > { %1484 = dma.hbm_to_vmem [thread:$0]  (!%p1845_p11), %s2144_s1, 96, %s189_s27, [#allocation6]  }
  0x1e   : > { %s2168_s29 = smov (%p39_p12, %s37_s29), 0  ;;  %p53_p2 = scmp.ne.s32.totalorder %s1737_s17, %s1733_s16 }
  0x1f   : > { %p54_p6 = scmp.eq.s32.totalorder %s1749_s20, 0  ;;  %s41_s8 = ssub.s32 %s1745_s19, %s2168_s29 }
  0x20   : > { %p1500_p9 = scmp.lt.s32.totalorder %s1749_s20, 2  ;;  %p44_p10 = scmp.eq.s32.totalorder %s41_s8, 0 }
  0x21   : > { %p55_p13 = por %p54_p6, %p53_p2  ;;  %p2154_p0 = scmp.eq.s32.totalorder %s1815_s21, 1 }
  0x22   : > { %s199_s10 = sand.u32 1, %s1737_s17   ;;  %s1415_s13 = sshll.u32 %s1745_s19, 6 }
  0x23   : > { %p1868_p3 = por %p2154_p0, %p53_p2  ;;  %s1319_s12 = sshll.u32 %s199_s10, 2 }
  0x24   : > { %s1874_s11 = scalar_select %p44_p10, %s1737_s17, %s46_s30  }
  0x25   : > { %s211_s27 = scalar_lea.hbm %s2143_s0, %s1415_s13  ;;  %s203_s28 = scalar_lea.vmem [#allocation2], %s1319_s12 }
  0x26   : > { %s213_s5 = sshll.u32 %s203_s28, 4  ;;  %p1880_p11 = pnand %p1500_p9, %p55_p13  ;;  %s214_s5 = int_to_ptr.vmem [resolvable:$true] %s213_s5 }
  0x27   : > { %s200_s7 = scalar_lea.sflag [#allocation3], %s199_s10  ;;  %s1594_s8 = scalar_lea.vmem %s214_s5, 64 }
  0x28   : > { %p1583_p12 = pneg %p1880_p11  ;;  %p1595_p5 = scmp.ne.s32.totalorder %s214_s5, %s1594_s8 }
  0x29   : > { %s1752_s30 = smov [#allocation2]  }
  0x2a   : > { %p1597_p7 = pnand %p1595_p5, %p1583_p12  ;;  %s1599_s22 = sshll.u32 %s1752_s30, 4  ;;  %s1600_s22 = int_to_ptr.vmem [resolvable:$false] %s1599_s22 }
  0x2b   : > { %s1601_s14 = scalar_lea.vmem %s1600_s22, 128  ;;  %p1602_p6 = scmp.lt.s32.totalorder %s214_s5, %s1600_s22 }
  0x2c   : > { %p1598_p2 = pneg %p1597_p7  ;;  %p1603_p10 = scmp.lt.s32.totalorder %s1601_s14, %s1594_s8 }
  0x2e   : > { %p1604_p0 = por %p1603_p10, %p1602_p6 }
  0x30   : > { %p1605_p1 = pnand %p1604_p0, %p1598_p2 }
  0x32   : > { %1608 = shalt.err (!%p1605_p1)
}
  0x33   : > { %1488 = dma.hbm_to_vmem [thread:$0]  (!%p1880_p11), %s211_s27, 64, %s214_s5, %s200_s7  }
  0x34   : > { %222 = sbr.rel (%p1836_p8) target bundleno = 511 (0x1ff), region = 28  ;;  %s1891_s10 = sand.u32 (!%p1836_p8), 1, %s1733_s16  }
  0x35   : > { %s1323_s12 = sshll.u32 (!%p1836_p8), %s1891_s10, 2  ;;  %s225_s13 = scalar_lea.sflag (!%p1836_p8), [#allocation3], %s1891_s10 }
  0x36   : > { %s228_s26 = scalar_lea.vmem (!%p1836_p8), [#allocation2], %s1323_s12 }
  0x39   : > { %1712 = dma.done.wait (%p1826_p4), %s225_s13, 64  }
  0x3a   : > { %1714 = vsyncadd (%p1826_p4), %s225_s13, 4294967232  ;;  %p2157_p1 = scmp.eq.s32.totalorder %s1815_s21, 0 }
  0x3c   : > { %1716 = dma.done.wait (%p2157_p1), [#allocation6], 96   ;;  %p2158_p9 = pmov %p2157_p1 }
  0x3d   : > { %v1753_v0 = vmov 0   ;;  %vm324_vm0 = vcmask 1041408   ;;  %v273_v1 = vld [vmem:[#allocation5] sm:$0x3]  ;;  %v822_v2 = vld [vmem:[#allocation5 + $0x4] sm:$0x3] }
  0x3e   : > { %1718 = vsyncadd (%p2158_p9), [#allocation6], 4294967200  ;;  %363 = vmatprep.mubr.bf16.mxu0 %v1753_v0  ;;  %403 = vmatprep.mubr.bf16.mxu1 %v1753_v0  ;;  %v1328_v3 = vld.sshfl [vmem:[%s228_s26] sm:$0x33 pattern:$0x76325410] }
  0x3f   : > { %274 = vxpose.xlu0.c.b16.start.end [1/1] (short) %v273_v1, 128  ;;  %823 = vxpose.xlu1.c.b16.start.end [1/1] (short) %v822_v2, 128  ;;  %v298_v4 = vcombine.high %v1328_v3, %v1328_v3  ;;  %v326_v5 = vsel %vm324_vm0, %v1328_v3, 0  ;;  %v556_v6 = vld [vmem:[#allocation5 + $0x2] sm:$0x3]  ;;  %vm299_vm1 = vcmask 31744   ;;  %s1952_s22 = sshll.u32 %s1891_s10, 7  ;;  %s1977_s27 = sshll.u32 %s1741_s18, 11 }
  0x40   : > { %s1955_s23 = scalar_lea.vmem [#allocation7], %s1952_s22  ;;  %s1971_s25 = scalar_lea.vmem [#allocation10], %s1952_s22 }
  0x41   : > { %1329 = vmatprep.subr.msk.bf16.mxu0 %vm324_vm0, %v298_v4  ;;  %1467 = vmatprep.subr.msk.bf16.mxu1 %vm324_vm0, %v298_v4  ;;  %s1114_s28 = sshll.u32 %s1955_s23, 4  ;;  %s1986_s7 = scalar_lea.hbm %s2145_s2, %s1977_s27  ;;  %s1988_s28 = int_to_ptr.vmem [resolvable:$true] %s1114_s28 }
  0x42   : > { %346 = vmatpush1.bf16.msra.mxu0 %v326_v5  ;;  %1468 = vmatpush1.bf16.msra.mxu1 %v326_v5  ;;  %s1089_s18 = scalar_lea.sflag [#allocation4], %s1891_s10  ;;  %s1609_s8 = scalar_lea.vmem %s1988_s28, 2048 }
  0x43   : > { %1354 = vmatprep.subr.msk.bf16.mxu1 %vm324_vm0, %v298_v4  ;;  %1379 = vmatprep.subr.msk.bf16.mxu0 %vm324_vm0, %v298_v4  ;;  %p1610_p4 = scmp.ne.s32.totalorder %s1988_s28, %s1609_s8  ;;  %s1754_s30 = smov [#allocation7]  }
  0x44   : > { %s1613_s14 = sshll.u32 %s1754_s30, 4  ;;  %s1614_s14 = int_to_ptr.vmem [resolvable:$false] %s1613_s14 }
  0x45   : > { %p1611_p8 = pnand %p1610_p4, %p1868_p3  ;;  %s1615_s12 = scalar_lea.vmem %s1614_s14, 4096 }
  0x46   : > { %p1616_p11 = scmp.lt.s32.totalorder %s1988_s28, %s1614_s14  ;;  %p1617_p12 = scmp.lt.s32.totalorder %s1615_s12, %s1609_s8 }
  0x47   : > { %p1612_p13 = pneg %p1611_p8 }
  0x48   : > { %p1618_p5 = por %p1617_p12, %p1616_p11 }
  0x4a   : > { %p1619_p7 = pnand %p1618_p5, %p1612_p13 }
  0x5c   : > { %557 = vxpose.xlu0.c.b16.start.end [1/1] (short) %v556_v6, 128 }
  0xa1   : > { %v282_v7 = vpop.trf.xlu0  ;;  %v831_v14 = vpop.trf.xlu1 }
  0xa2   : > { %1330 = vmatmul.mubr.msk.bf16.vlgmr.msra.gmra.mxu0 %vm299_vm1, %v282_v7 }
  0xa3   : > { %373 = vmatprep.mubr.bf16.mxu0 %v1753_v0  ;;  %878 = vmatpush1.bf16.msra.mxu0 %v326_v5 }
  0xa5   : > { %v283_v8 = vpop.trf.xlu0  ;;  %v832_v16 = vpop.trf.xlu1 }
  0xa9   : > { %v284_v9 = vpop.trf.xlu0  ;;  %v833_v18 = vpop.trf.xlu1 }
  0xaa   : > { %1331 = vmatmul.mubr.msk.bf16.gmra.mxu0 %vm299_vm1, %v283_v8 }
  0xab   : > { %383 = vmatprep.mubr.bf16.mxu0 %v1753_v0 }
  0xad   : > { %v285_v10 = vpop.trf.xlu0  ;;  %v834_v20 = vpop.trf.xlu1 }
  0xb1   : > { %v286_v11 = vpop.trf.xlu0  ;;  %v835_v22 = vpop.trf.xlu1 }
  0xb2   : > { %1332 = vmatmul.mubr.msk.bf16.gmra.mxu0 %vm299_vm1, %v284_v9  ;;  %1334 = vmatmul.mubr.msk.bf16.vlgmr.msra.gmra.mxu1 %vm299_vm1, %v286_v11 }
  0xb3   : > { %612 = vmatpush1.bf16.msra.mxu1 %v326_v5  ;;  %393 = vmatprep.mubr.bf16.mxu0 %v1753_v0 }
  0xb4   : > { %413 = vmatprep.mubr.bf16.mxu1 %v1753_v0 }
  0xb5   : > { %v287_v12 = vpop.trf.xlu0  ;;  %v836_v24 = vpop.trf.xlu1 }
  0xb9   : > { %v288_v13 = vpop.trf.xlu0  ;;  %v837_v26 = vpop.trf.xlu1 }
  0xba   : > { %1333 = vmatmul.mubr.msk.bf16.gmra.mxu0 %vm299_vm1, %v285_v10  ;;  %1335 = vmatmul.mubr.msk.bf16.gmra.mxu1 %vm299_vm1, %v287_v12 }
  0xbb   : > { %423 = vmatprep.mubr.bf16.mxu1 %v1753_v0  ;;  %895 = vmatprep.mubr.bf16.mxu0 %v1753_v0 }
  0xbd   : > { %v289_v15 = vpop.trf.xlu0  ;;  %v838_v28 = vpop.trf.xlu1 }
  0xc1   : > { %v565_v17 = vpop.trf.xlu0 }
  0xc2   : > { %1336 = vmatmul.mubr.msk.bf16.gmra.mxu1 %vm299_vm1, %v288_v13  ;;  %1380 = vmatmul.mubr.msk.bf16.vlgmr.msra.gmra.mxu0 %vm299_vm1, %v831_v14 }
  0xc3   : > { %433 = vmatprep.mubr.bf16.mxu1 %v1753_v0  ;;  %905 = vmatprep.mubr.bf16.mxu0 %v1753_v0 }
  0xc5   : > { %v566_v19 = vpop.trf.xlu0 }
  0xc9   : > { %v567_v21 = vpop.trf.xlu0 }
  0xca   : > { %1337 = vmatmul.mubr.msk.bf16.gmra.mxu1 %vm299_vm1, %v289_v15  ;;  %1381 = vmatmul.mubr.msk.bf16.gmra.mxu0 %vm299_vm1, %v832_v16 }
  0xcb   : > { %629 = vmatprep.mubr.bf16.mxu1 %v1753_v0  ;;  %915 = vmatprep.mubr.bf16.mxu0 %v1753_v0 }
  0xcd   : > { %v568_v23 = vpop.trf.xlu0 }
  0xd1   : > { %v569_v25 = vpop.trf.xlu0 }
  0xd2   : > { %1355 = vmatmul.mubr.msk.bf16.vlgmr.msra.gmra.mxu1 %vm299_vm1, %v565_v17  ;;  %1382 = vmatmul.mubr.msk.bf16.gmra.mxu0 %vm299_vm1, %v833_v18 }
  0xd3   : > { %639 = vmatprep.mubr.bf16.mxu1 %v1753_v0  ;;  %925 = vmatprep.mubr.bf16.mxu0 %v1753_v0 }
  0xd5   : > { %v570_v27 = vpop.trf.xlu0 }
  0xd9   : > { %v571_v29 = vpop.trf.xlu0 }
  0xda   : > { %1356 = vmatmul.mubr.msk.bf16.gmra.mxu1 %vm299_vm1, %v566_v19  ;;  %1383 = vmatmul.mubr.msk.bf16.gmra.mxu0 %vm299_vm1, %v834_v20 }
  0xdb   : > { %649 = vmatprep.mubr.bf16.mxu1 %v1753_v0  ;;  %935 = vmatprep.mubr.bf16.mxu0 %v1753_v0 }
  0xdd   : > { %v572_v30 = vpop.trf.xlu0 }
  0xe2   : > { %1357 = vmatmul.mubr.msk.bf16.gmra.mxu1 %vm299_vm1, %v567_v21  ;;  %1384 = vmatmul.mubr.msk.bf16.gmra.mxu0 %vm299_vm1, %v835_v22 }
  0xe3   : > { %659 = vmatprep.mubr.bf16.mxu1 %v1753_v0  ;;  %945 = vmatprep.mubr.bf16.mxu0 %v1753_v0 }
  0xea   : > { %1358 = vmatmul.mubr.msk.bf16.gmra.mxu1 %vm299_vm1, %v568_v23  ;;  %1385 = vmatmul.mubr.msk.bf16.gmra.mxu0 %vm299_vm1, %v836_v24 }
  0xeb   : > { %669 = vmatprep.mubr.bf16.mxu1 %v1753_v0  ;;  %955 = vmatprep.mubr.bf16.mxu0 %v1753_v0 }
  0xf2   : > { %1359 = vmatmul.mubr.msk.bf16.gmra.mxu1 %vm299_vm1, %v569_v25  ;;  %1386 = vmatmul.mubr.msk.bf16.gmra.mxu0 %vm299_vm1, %v837_v26 }
  0xf3   : > { %679 = vmatprep.mubr.bf16.mxu1 %v1753_v0  ;;  %965 = vmatprep.mubr.bf16.mxu0 %v1753_v0 }
  0xfa   : > { %1360 = vmatmul.mubr.msk.bf16.gmra.mxu1 %vm299_vm1, %v570_v27  ;;  %1387 = vmatmul.mubr.msk.bf16.gmra.mxu0 %vm299_vm1, %v838_v28 }
  0xfb   : > { %689 = vmatprep.mubr.bf16.mxu1 %v1753_v0 }
 0x102   : > { %1361 = vmatmul.mubr.msk.bf16.gmra.mxu1 %vm299_vm1, %v571_v29 }
 0x103   : > { %699 = vmatprep.mubr.bf16.mxu1 %v1753_v0 }
 0x10a   : > { %1362 = vmatmul.mubr.msk.bf16.gmra.mxu1 %vm299_vm1, %v572_v30 }
 0x162   : > { %v365_v31 = vpop.f32.mrf.mxu0 }
 0x164   : > { %v367_v32 = vpop.f32.mrf.mxu0 }
 0x165   : > { %v1416_v33 = vpack.c.bf16 %v367_v32, %v365_v31 }
 0x166   : > { %v369_v34 = vpop.f32.mrf.mxu0 }
 0x167   : > { %540 = vst [vmem:[%s1955_s23] sm:$0xff] %v1416_v33 }
 0x168   : > { %v371_v35 = vpop.f32.mrf.mxu0 }
 0x169   : > { %v1417_v36 = vpack.c.bf16 %v371_v35, %v369_v34 }
 0x16a   : > { %v375_v37 = vpop.f32.mrf.mxu0 }
 0x16b   : > { %541 = vst [vmem:[%s1955_s23 + $0x8] sm:$0xff] %v1417_v36 }
 0x16c   : > { %v377_v38 = vpop.f32.mrf.mxu0 }
 0x16d   : > { %v1418_v39 = vpack.c.bf16 %v377_v38, %v375_v37 }
 0x16e   : > { %v379_v40 = vpop.f32.mrf.mxu0 }
 0x16f   : > { %542 = vst [vmem:[%s1955_s23 + $0x10] sm:$0xff] %v1418_v39 }
 0x170   : > { %v381_v41 = vpop.f32.mrf.mxu0 }
 0x171   : > { %v1419_v42 = vpack.c.bf16 %v381_v41, %v379_v40 }
 0x172   : > { %v385_v43 = vpop.f32.mrf.mxu0  ;;  %v405_v44 = vpop.f32.mrf.mxu1 }
 0x173   : > { %543 = vst [vmem:[%s1955_s23 + $0x18] sm:$0xff] %v1419_v42 }
 0x174   : > { %v387_v45 = vpop.f32.mrf.mxu0  ;;  %v407_v46 = vpop.f32.mrf.mxu1 }
 0x175   : > { %v1420_v47 = vpack.c.bf16 %v387_v45, %v385_v43  ;;  %v1424_v48 = vpack.c.bf16 %v407_v46, %v405_v44 }
 0x176   : > { %v389_v49 = vpop.f32.mrf.mxu0  ;;  %v409_v50 = vpop.f32.mrf.mxu1 }
 0x177   : > { %544 = vst [vmem:[%s1955_s23 + $0x20] sm:$0xff] %v1420_v47  ;;  %548 = vst [vmem:[%s1955_s23 + $0x40] sm:$0xff] %v1424_v48 }
 0x178   : > { %v391_v51 = vpop.f32.mrf.mxu0  ;;  %v411_v52 = vpop.f32.mrf.mxu1 }
 0x179   : > { %v1421_v53 = vpack.c.bf16 %v391_v51, %v389_v49  ;;  %v1425_v54 = vpack.c.bf16 %v411_v52, %v409_v50 }
 0x17a   : > { %v395_v55 = vpop.f32.mrf.mxu0  ;;  %v415_v56 = vpop.f32.mrf.mxu1 }
 0x17b   : > { %545 = vst [vmem:[%s1955_s23 + $0x28] sm:$0xff] %v1421_v53  ;;  %549 = vst [vmem:[%s1955_s23 + $0x48] sm:$0xff] %v1425_v54 }
 0x17c   : > { %v397_v57 = vpop.f32.mrf.mxu0  ;;  %v417_v58 = vpop.f32.mrf.mxu1 }
 0x17d   : > { %v1422_v59 = vpack.c.bf16 %v397_v57, %v395_v55  ;;  %v1426_v60 = vpack.c.bf16 %v417_v58, %v415_v56 }
 0x17e   : > { %v399_v61 = vpop.f32.mrf.mxu0  ;;  %v419_v62 = vpop.f32.mrf.mxu1 }
 0x17f   : > { %546 = vst [vmem:[%s1955_s23 + $0x30] sm:$0xff] %v1422_v59  ;;  %550 = vst [vmem:[%s1955_s23 + $0x50] sm:$0xff] %v1426_v60 }
 0x180   : > { %v401_v63 = vpop.f32.mrf.mxu0  ;;  %v421_v0 = vpop.f32.mrf.mxu1 }
 0x181   : > { %v1423_v1 = vpack.c.bf16 %v401_v63, %v399_v61  ;;  %v1427_v2 = vpack.c.bf16 %v421_v0, %v419_v62 }
 0x182   : > { %v425_v3 = vpop.f32.mrf.mxu1  ;;  %v897_v4 = vpop.f32.mrf.mxu0 }
 0x183   : > { %547 = vst [vmem:[%s1955_s23 + $0x38] sm:$0xff] %v1423_v1  ;;  %551 = vst [vmem:[%s1955_s23 + $0x58] sm:$0xff] %v1427_v2 }
 0x184   : > { %v427_v5 = vpop.f32.mrf.mxu1  ;;  %v899_v6 = vpop.f32.mrf.mxu0 }
 0x185   : > { %v1428_v7 = vpack.c.bf16 %v427_v5, %v425_v3  ;;  %v1448_v8 = vpack.c.bf16 %v899_v6, %v897_v4 }
 0x186   : > { %v429_v9 = vpop.f32.mrf.mxu1  ;;  %v901_v10 = vpop.f32.mrf.mxu0 }
 0x187   : > { %552 = vst [vmem:[%s1955_s23 + $0x60] sm:$0xff] %v1428_v7  ;;  %1072 = vst [vmem:[%s1971_s25] sm:$0xff] %v1448_v8 }
 0x188   : > { %v431_v11 = vpop.f32.mrf.mxu1  ;;  %v903_v12 = vpop.f32.mrf.mxu0 }
 0x189   : > { %v1429_v13 = vpack.c.bf16 %v431_v11, %v429_v9  ;;  %v1449_v14 = vpack.c.bf16 %v903_v12, %v901_v10 }
 0x18a   : > { %v435_v15 = vpop.f32.mrf.mxu1  ;;  %v907_v16 = vpop.f32.mrf.mxu0 }
 0x18b   : > { %553 = vst [vmem:[%s1955_s23 + $0x68] sm:$0xff] %v1429_v13  ;;  %1073 = vst [vmem:[%s1971_s25 + $0x8] sm:$0xff] %v1449_v14 }
 0x18c   : > { %v437_v17 = vpop.f32.mrf.mxu1  ;;  %v909_v18 = vpop.f32.mrf.mxu0 }
 0x18d   : > { %v1430_v19 = vpack.c.bf16 %v437_v17, %v435_v15  ;;  %v1450_v20 = vpack.c.bf16 %v909_v18, %v907_v16 }
 0x18e   : > { %v439_v21 = vpop.f32.mrf.mxu1  ;;  %v911_v22 = vpop.f32.mrf.mxu0 }
 0x18f   : > { %554 = vst [vmem:[%s1955_s23 + $0x70] sm:$0xff] %v1430_v19  ;;  %1074 = vst [vmem:[%s1971_s25 + $0x10] sm:$0xff] %v1450_v20 }
 0x190   : > { %v441_v23 = vpop.f32.mrf.mxu1  ;;  %v913_v24 = vpop.f32.mrf.mxu0 }
 0x191   : > { %v1431_v25 = vpack.c.bf16 %v441_v23, %v439_v21  ;;  %v1451_v26 = vpack.c.bf16 %v913_v24, %v911_v22 }
 0x192   : > { %v631_v27 = vpop.f32.mrf.mxu1  ;;  %v917_v28 = vpop.f32.mrf.mxu0 }
 0x193   : > { %555 = vst [vmem:[%s1955_s23 + $0x78] sm:$0xff] %v1431_v25  ;;  %1075 = vst [vmem:[%s1971_s25 + $0x18] sm:$0xff] %v1451_v26 }
 0x194   : > { %v633_v29 = vpop.f32.mrf.mxu1  ;;  %v919_v30 = vpop.f32.mrf.mxu0 }
 0x195   : > { %1622 = shalt.err (!%p1619_p7)
}
 0x196   : > { %s1623_s13 = scalar_lea.hbm %s1986_s7, 2048  ;;  %s1627_s5 = scalar_lea.hbm %s2145_s2, 4096 }
 0x197   : > { %p1624_p2 = scmp.ne.s32.totalorder %s1986_s7, %s1623_s13  ;;  %p1628_p0 = scmp.lt.s32.totalorder %s1986_s7, %s2145_s2 }
 0x198   : > { %p1629_p1 = scmp.lt.s32.totalorder %s1627_s5, %s1623_s13 }
 0x199   : > { %p1625_p6 = pnand %p1624_p2, %p1868_p3 }
 0x19a   : > { %p1630_p9 = por %p1629_p1, %p1628_p0 }
 0x19b   : > { %p1626_p10 = pneg %p1625_p6 }
 0x19d   : > { %p1631_p4 = pnand %p1630_p9, %p1626_p10 }
 0x19f   : > { %1634 = shalt.err (!%p1631_p4)
}
 0x1a0   : > { %s1755_s8 = smov 128   ;;  %s1756_s14 = smov 8   ;;  %v1432_v31 = vpack.c.bf16 %v633_v29, %v631_v27  ;;  %v1452_v32 = vpack.c.bf16 %v919_v30, %v917_v28  ;;  %v635_v33 = vpop.f32.mrf.mxu1  ;;  %v921_v34 = vpop.f32.mrf.mxu0 }
 0x1a1   : > { %1475 = dma.vmem_to_hbm [thread:$0]  (%p1868_p3), %s1988_s28, 2048, %s1986_s7, %s1089_s18, %s1755_s8, %s1755_s8, %s1756_s14  }
 0x1a2   : > { %s2019_s12 = scalar_lea.vmem [#allocation8], %s1952_s22  ;;  %1076 = vst [vmem:[%s1971_s25 + $0x20] sm:$0xff] %v1452_v32  ;;  %v637_v35 = vpop.f32.mrf.mxu1  ;;  %v923_v36 = vpop.f32.mrf.mxu0  ;;  %s1093_s10 = sand.u32 1, %s1815_s21  }
 0x1a3   : > { %806 = vst [vmem:[%s2019_s12] sm:$0xff] %v1432_v31  ;;  %v1433_v37 = vpack.c.bf16 %v637_v35, %v635_v33  ;;  %v1453_v38 = vpack.c.bf16 %v923_v36, %v921_v34  ;;  %s1132_s22 = sshll.u32 %s2019_s12, 4  ;;  %s1150_s28 = sshll.u32 %s1971_s25, 4  ;;  %s2057_s22 = int_to_ptr.vmem [resolvable:$true] %s1132_s22  ;;  %s2065_s28 = int_to_ptr.vmem [resolvable:$true] %s1150_s28 }
 0x1a4   : > { %v641_v39 = vpop.f32.mrf.mxu1  ;;  %v927_v40 = vpop.f32.mrf.mxu0  ;;  %s2055_s13 = scalar_lea.hbm %s2146_s3, %s1977_s27  ;;  %s2063_s21 = scalar_lea.hbm %s2147_s4, %s1977_s27 }
 0x1a5   : > { %807 = vst [vmem:[%s2019_s12 + $0x8] sm:$0xff] %v1433_v37  ;;  %1077 = vst [vmem:[%s1971_s25 + $0x28] sm:$0xff] %v1453_v38  ;;  %s1635_s5 = scalar_lea.vmem %s2057_s22, 2048  ;;  %s1757_s6 = smov [#allocation8]  }
 0x1a6   : > { %v643_v41 = vpop.f32.mrf.mxu1  ;;  %v929_v42 = vpop.f32.mrf.mxu0  ;;  %p1636_p8 = scmp.ne.s32.totalorder %s2057_s22, %s1635_s5  ;;  %s1639_s30 = sshll.u32 %s1757_s6, 4  ;;  %s1640_s30 = int_to_ptr.vmem [resolvable:$false] %s1639_s30 }
 0x1a7   : > { %v1434_v43 = vpack.c.bf16 %v643_v41, %v641_v39  ;;  %v1454_v44 = vpack.c.bf16 %v929_v42, %v927_v40  ;;  %s1641_s7 = scalar_lea.vmem %s1640_s30, 4096  ;;  %p1642_p12 = scmp.lt.s32.totalorder %s2057_s22, %s1640_s30 }
 0x1a8   : > { %v645_v45 = vpop.f32.mrf.mxu1  ;;  %v931_v46 = vpop.f32.mrf.mxu0  ;;  %p1637_p13 = pnand %p1636_p8, %p1868_p3  ;;  %p1643_p5 = scmp.lt.s32.totalorder %s1641_s7, %s1635_s5 }
 0x1a9   : > { %808 = vst [vmem:[%s2019_s12 + $0x10] sm:$0xff] %v1434_v43  ;;  %1078 = vst [vmem:[%s1971_s25 + $0x30] sm:$0xff] %v1454_v44 }
 0x1aa   : > { %v647_v47 = vpop.f32.mrf.mxu1  ;;  %v933_v48 = vpop.f32.mrf.mxu0  ;;  %p1638_p11 = pneg %p1637_p13  ;;  %p1644_p7 = por %p1643_p5, %p1642_p12 }
 0x1ab   : > { %v1435_v49 = vpack.c.bf16 %v647_v47, %v645_v45  ;;  %v1455_v50 = vpack.c.bf16 %v933_v48, %v931_v46 }
 0x1ac   : > { %v651_v51 = vpop.f32.mrf.mxu1  ;;  %v937_v52 = vpop.f32.mrf.mxu0  ;;  %p1645_p2 = pnand %p1644_p7, %p1638_p11 }
 0x1ad   : > { %809 = vst [vmem:[%s2019_s12 + $0x18] sm:$0xff] %v1435_v49  ;;  %1079 = vst [vmem:[%s1971_s25 + $0x38] sm:$0xff] %v1455_v50 }
 0x1ae   : > { %v653_v53 = vpop.f32.mrf.mxu1  ;;  %v939_v54 = vpop.f32.mrf.mxu0 }
 0x1af   : > { %v1436_v55 = vpack.c.bf16 %v653_v53, %v651_v51  ;;  %v1456_v56 = vpack.c.bf16 %v939_v54, %v937_v52 }
 0x1b0   : > { %v655_v57 = vpop.f32.mrf.mxu1  ;;  %v941_v58 = vpop.f32.mrf.mxu0 }
 0x1b1   : > { %810 = vst [vmem:[%s2019_s12 + $0x20] sm:$0xff] %v1436_v55  ;;  %1080 = vst [vmem:[%s1971_s25 + $0x40] sm:$0xff] %v1456_v56 }
 0x1b2   : > { %v657_v59 = vpop.f32.mrf.mxu1  ;;  %v943_v60 = vpop.f32.mrf.mxu0 }
 0x1b3   : > { %v1437_v61 = vpack.c.bf16 %v657_v59, %v655_v57  ;;  %v1457_v62 = vpack.c.bf16 %v943_v60, %v941_v58 }
 0x1b4   : > { %v661_v63 = vpop.f32.mrf.mxu1  ;;  %v947_v0 = vpop.f32.mrf.mxu0 }
 0x1b5   : > { %811 = vst [vmem:[%s2019_s12 + $0x28] sm:$0xff] %v1437_v61  ;;  %1081 = vst [vmem:[%s1971_s25 + $0x48] sm:$0xff] %v1457_v62 }
 0x1b6   : > { %v663_v1 = vpop.f32.mrf.mxu1  ;;  %v949_v2 = vpop.f32.mrf.mxu0 }
 0x1b7   : > { %v1438_v3 = vpack.c.bf16 %v663_v1, %v661_v63  ;;  %v1458_v4 = vpack.c.bf16 %v949_v2, %v947_v0 }
 0x1b8   : > { %v665_v5 = vpop.f32.mrf.mxu1  ;;  %v951_v6 = vpop.f32.mrf.mxu0 }
 0x1b9   : > { %812 = vst [vmem:[%s2019_s12 + $0x30] sm:$0xff] %v1438_v3  ;;  %1082 = vst [vmem:[%s1971_s25 + $0x50] sm:$0xff] %v1458_v4 }
 0x1ba   : > { %v667_v7 = vpop.f32.mrf.mxu1  ;;  %v953_v8 = vpop.f32.mrf.mxu0 }
 0x1bb   : > { %v1439_v9 = vpack.c.bf16 %v667_v7, %v665_v5  ;;  %v1459_v10 = vpack.c.bf16 %v953_v8, %v951_v6 }
 0x1bc   : > { %v671_v11 = vpop.f32.mrf.mxu1  ;;  %v957_v12 = vpop.f32.mrf.mxu0 }
 0x1bd   : > { %813 = vst [vmem:[%s2019_s12 + $0x38] sm:$0xff] %v1439_v9  ;;  %1083 = vst [vmem:[%s1971_s25 + $0x58] sm:$0xff] %v1459_v10 }
 0x1be   : > { %v673_v13 = vpop.f32.mrf.mxu1  ;;  %v959_v14 = vpop.f32.mrf.mxu0 }
 0x1bf   : > { %v1440_v15 = vpack.c.bf16 %v673_v13, %v671_v11  ;;  %v1460_v16 = vpack.c.bf16 %v959_v14, %v957_v12 }
 0x1c0   : > { %v675_v17 = vpop.f32.mrf.mxu1  ;;  %v961_v18 = vpop.f32.mrf.mxu0 }
 0x1c1   : > { %814 = vst [vmem:[%s2019_s12 + $0x40] sm:$0xff] %v1440_v15  ;;  %1084 = vst [vmem:[%s1971_s25 + $0x60] sm:$0xff] %v1460_v16 }
 0x1c2   : > { %v677_v19 = vpop.f32.mrf.mxu1  ;;  %v963_v20 = vpop.f32.mrf.mxu0 }
 0x1c3   : > { %v1441_v21 = vpack.c.bf16 %v677_v19, %v675_v17  ;;  %v1461_v22 = vpack.c.bf16 %v963_v20, %v961_v18 }
 0x1c4   : > { %v681_v23 = vpop.f32.mrf.mxu1  ;;  %v967_v24 = vpop.f32.mrf.mxu0 }
 0x1c5   : > { %815 = vst [vmem:[%s2019_s12 + $0x48] sm:$0xff] %v1441_v21  ;;  %1085 = vst [vmem:[%s1971_s25 + $0x68] sm:$0xff] %v1461_v22 }
 0x1c6   : > { %v683_v25 = vpop.f32.mrf.mxu1  ;;  %v969_v26 = vpop.f32.mrf.mxu0 }
 0x1c7   : > { %v1442_v27 = vpack.c.bf16 %v683_v25, %v681_v23  ;;  %v1462_v28 = vpack.c.bf16 %v969_v26, %v967_v24 }
 0x1c8   : > { %v685_v29 = vpop.f32.mrf.mxu1  ;;  %v971_v30 = vpop.f32.mrf.mxu0 }
 0x1c9   : > { %816 = vst [vmem:[%s2019_s12 + $0x50] sm:$0xff] %v1442_v27  ;;  %1086 = vst [vmem:[%s1971_s25 + $0x70] sm:$0xff] %v1462_v28 }
 0x1ca   : > { %v687_v31 = vpop.f32.mrf.mxu1  ;;  %v973_v32 = vpop.f32.mrf.mxu0 }
 0x1cb   : > { %v1443_v33 = vpack.c.bf16 %v687_v31, %v685_v29  ;;  %v1463_v34 = vpack.c.bf16 %v973_v32, %v971_v30 }
 0x1cc   : > { %v691_v35 = vpop.f32.mrf.mxu1 }
 0x1cd   : > { %817 = vst [vmem:[%s2019_s12 + $0x58] sm:$0xff] %v1443_v33  ;;  %1087 = vst [vmem:[%s1971_s25 + $0x78] sm:$0xff] %v1463_v34  ;;  %s2068_s25 = scalar_lea.sflag [#allocation9], %s1093_s10 }
 0x1ce   : > { %v693_v36 = vpop.f32.mrf.mxu1 }
 0x1cf   : > { %v1444_v37 = vpack.c.bf16 %v693_v36, %v691_v35 }
 0x1d0   : > { %v695_v38 = vpop.f32.mrf.mxu1 }
 0x1d1   : > { %818 = vst [vmem:[%s2019_s12 + $0x60] sm:$0xff] %v1444_v37 }
 0x1d2   : > { %v697_v39 = vpop.f32.mrf.mxu1 }
 0x1d3   : > { %v1445_v40 = vpack.c.bf16 %v697_v39, %v695_v38 }
 0x1d4   : > { %v701_v41 = vpop.f32.mrf.mxu1 }
 0x1d5   : > { %819 = vst [vmem:[%s2019_s12 + $0x68] sm:$0xff] %v1445_v40 }
 0x1d6   : > { %v703_v42 = vpop.f32.mrf.mxu1 }
 0x1d7   : > { %v1446_v43 = vpack.c.bf16 %v703_v42, %v701_v41 }
 0x1d8   : > { %v705_v44 = vpop.f32.mrf.mxu1 }
 0x1d9   : > { %820 = vst [vmem:[%s2019_s12 + $0x70] sm:$0xff] %v1446_v43 }
 0x1da   : > { %v707_v45 = vpop.f32.mrf.mxu1 }
 0x1db   : > { %v1447_v46 = vpack.c.bf16 %v707_v45, %v705_v44 }
 0x1dd   : > { %821 = vst [vmem:[%s2019_s12 + $0x78] sm:$0xff] %v1447_v46 }
 0x1de   : > { %1648 = shalt.err (!%p1645_p2)
}
 0x1df   : > { %s1649_s27 = scalar_lea.hbm %s2055_s13, 2048  ;;  %s1653_s18 = scalar_lea.hbm %s2146_s3, 4096 }
 0x1e0   : > { %p1650_p6 = scmp.ne.s32.totalorder %s2055_s13, %s1649_s27  ;;  %p1654_p1 = scmp.lt.s32.totalorder %s2055_s13, %s2146_s3 }
 0x1e1   : > { %p1655_p9 = scmp.lt.s32.totalorder %s1653_s18, %s1649_s27 }
 0x1e2   : > { %p1651_p10 = pnand %p1650_p6, %p1868_p3 }
 0x1e3   : > { %p1656_p4 = por %p1655_p9, %p1654_p1 }
 0x1e4   : > { %p1652_p0 = pneg %p1651_p10 }
 0x1e6   : > { %p1657_p8 = pnand %p1656_p4, %p1652_p0 }
 0x1e8   : > { %1660 = shalt.err (!%p1657_p8)
}
 0x1e9   : > { %1476 = dma.vmem_to_hbm [thread:$0]  (%p1868_p3), %s2057_s22, 2048, %s2055_s13, %s2068_s25, %s1755_s8, %s1755_s8, %s1756_s14  }
 0x1ea   : > { %s1661_s5 = scalar_lea.vmem %s2065_s28, 2048  ;;  %s1758_s6 = smov [#allocation10]  }
 0x1eb   : > { %p1662_p13 = scmp.ne.s32.totalorder %s2065_s28, %s1661_s5  ;;  %s1665_s30 = sshll.u32 %s1758_s6, 4  ;;  %s1666_s30 = int_to_ptr.vmem [resolvable:$false] %s1665_s30 }
 0x1ec   : > { %s1667_s7 = scalar_lea.vmem %s1666_s30, 4096  ;;  %p1668_p5 = scmp.lt.s32.totalorder %s2065_s28, %s1666_s30 }
 0x1ed   : > { %p1663_p11 = pnand %p1662_p13, %p1868_p3  ;;  %p1669_p7 = scmp.lt.s32.totalorder %s1667_s7, %s1661_s5 }
 0x1ef   : > { %p1664_p12 = pneg %p1663_p11  ;;  %p1670_p2 = por %p1669_p7, %p1668_p5 }
 0x1f1   : > { %p1671_p6 = pnand %p1670_p2, %p1664_p12 }
 0x1f3   : > { %1674 = shalt.err (!%p1671_p6)
}
 0x1f4   : > { %s1675_s27 = scalar_lea.hbm %s2063_s21, 2048  ;;  %s1679_s12 = scalar_lea.hbm %s2147_s4, 4096 }
 0x1f5   : > { %p1676_p10 = scmp.ne.s32.totalorder %s2063_s21, %s1675_s27  ;;  %p1680_p9 = scmp.lt.s32.totalorder %s2063_s21, %s2147_s4 }
 0x1f6   : > { %p1681_p4 = scmp.lt.s32.totalorder %s1679_s12, %s1675_s27 }
 0x1f7   : > { %p1677_p0 = pnand %p1676_p10, %p1868_p3 }
 0x1f8   : > { %p1682_p8 = por %p1681_p4, %p1680_p9 }
 0x1f9   : > { %p1678_p1 = pneg %p1677_p0 }
 0x1fb   : > { %p1683_p13 = pnand %p1682_p8, %p1678_p1 }
 0x1fd   : > { %1686 = shalt.err (!%p1683_p13)
}
 0x1fe   : > { %1477 = dma.vmem_to_hbm [thread:$0]  (%p1868_p3), %s2065_s28, 2048, %s2063_s21, %s2068_s25, %s1755_s8, %s1755_s8, %s1756_s14  }
 0x1ff PF: > { %s1165_s26 = sand.u32 1, %s1729_s15   ;;  %p2159_p11 = scmp.ne.s32.totalorder %s2151_s24, 0 }
 0x200   : > { %p2160_p12 = scmp.ge.s32.totalorder %s1749_s20, 2  ;;  %s1166_s23 = scalar_lea.sflag [#allocation4], %s1165_s26 }
 0x202   : > { %p1490_p5 = pnand %p2160_p12, %p2159_p11 }
 0x204   : > { %p1491_p7 = pneg %p1490_p5 }
 0x206   : > { %1720 = dma.done.wait (%p1491_p7), %s1166_s23, 2048  }
 0x207   : > { %1722 = vsyncadd (%p1491_p7), %s1166_s23, 4294965248  ;;  %s2161_s9 = sadd.s32 4294967294, %s1749_s20  }
 0x208   : > { %s1174_s5 = sand.u32 1, %s2161_s9  }
 0x209   : > { %s1175_s6 = scalar_lea.sflag [#allocation9], %s1174_s5 }
 0x20a   : > { %1724 = dma.done.wait (%p1491_p7), %s1175_s6, 4096  }
 0x20b   : > { %1726 = vsyncadd (%p1491_p7), %s1175_s6, 4294963200  ;;  %s25_s20 = sadd.s32 1, %s1749_s20   ;;  %s2162_s15 = smov %s1733_s16 }
 0x20c   : > { %p22_p3 = scmp.ge.s32.totalorder %s25_s20, 4   ;;  %s2163_s16 = smov %s1737_s17 }
 0x20d   : > { %s2164_s17 = smov %s1874_s11  ;;  %s2165_s18 = smov %s1745_s19 }
 0x20e   : > { %s2166_s19 = smov %s2168_s29  ;;  %24 = sbr.rel (!%p22_p3) target bundleno = 9 (0x9), region = 109 }
 0x213   :  { %1189 = vsyncpa [#allocation3], 1 }
 0x214   :  { %1191 = vsyncpa [#allocation3 + $0x1], 1 }
 0x215   :  { %1192 = vsyncpa [#allocation6], 1 }
 0x216   :  { %1193 = vsyncpa [#allocation4], 1 }
 0x217   :  { %1195 = vsyncpa [#allocation4 + $0x1], 1 }
 0x218   :  { %1196 = vsyncpa [#allocation9], 1 }
 0x219   :  { %1198 = vsyncpa [#allocation9 + $0x1], 1 }

</bundles_post_ra>
